<compile_context>
chip_gen: v6e
topology: v6e:2x2x1
jax: 0.10.0
libtpu: 0.0.40
codegen_flags: <defaults>
</compile_context>

<pallas_src>
import functools
import math

import jax
import jax.numpy as jnp
from jax import lax
from jax.experimental import pallas as pl
from jax.experimental.pallas import tpu as pltpu


# Large finite negative for masked_fill.  For rows with >=1 unmasked key this
# is numerically identical to -inf (exp underflows to exactly 0) but keeps the
# online softmax NaN-free.  NOTE: torch yields NaN for fully-masked rows; here
# a fully-masked row yields a uniform distribution instead (safer).
_MASK_VALUE = -0.7 * float(jnp.finfo(jnp.float32).max)


# --------------------------------------------------------------------------
# Path A: torch-parity kernel (emits output AND attention probabilities).
# Blocks: q (1, tq, D), k/v (1, Lk, D), out (1, tq, D), attn (1, tq, Lk).
# --------------------------------------------------------------------------
def _sdpa_attn_kernel(q_ref, k_ref, v_ref, o_ref, attn_ref, *, inv_scale):
    q = q_ref[0] * inv_scale                                   # (tq, D), native dtype
    # Contract D of q with D of k directly -> no explicit k.T transpose.
    s = lax.dot_general(q, k_ref[0], (((1,), (1,)), ((), ())),
                        preferred_element_type=jnp.float32)    # (tq, Lk) f32
    m = jnp.max(s, axis=-1, keepdims=True)
    e = jnp.exp(s - m)
    p = e * pl.reciprocal(jnp.sum(e, axis=-1, keepdims=True), approx=True)
    attn_ref[0] = p.astype(attn_ref.dtype)
    o_ref[0] = jnp.dot(p.astype(v_ref.dtype), v_ref[0],
                       preferred_element_type=jnp.float32).astype(o_ref.dtype)


def _sdpa_attn_kernel_masked(mask_ref, q_ref, k_ref, v_ref, o_ref, attn_ref,
                             *, inv_scale):
    q = q_ref[0] * inv_scale
    s = lax.dot_general(q, k_ref[0], (((1,), (1,)), ((), ())),
                        preferred_element_type=jnp.float32)
    s = jnp.where(mask_ref[0] == 0, _MASK_VALUE, s)            # masked_fill(mask==0, -inf)
    m = jnp.max(s, axis=-1, keepdims=True)
    e = jnp.exp(s - m)
    p = e * pl.reciprocal(jnp.sum(e, axis=-1, keepdims=True), approx=True)
    attn_ref[0] = p.astype(attn_ref.dtype)
    o_ref[0] = jnp.dot(p.astype(v_ref.dtype), v_ref[0],
                       preferred_element_type=jnp.float32).astype(o_ref.dtype)


# --------------------------------------------------------------------------
# Path B: flash-attention-style online softmax (output only, no L^2 traffic).
# Grid (B*H, nq, nk) with nk innermost/"arbitrary"; running stats in VMEM.
# --------------------------------------------------------------------------
def _sdpa_flash_kernel(q_ref, k_ref, v_ref, o_ref, m_sc, l_sc, acc_sc,
                       *, inv_scale):
    j = pl.program_id(2)

    @pl.when(j == 0)
    def _():
        m_sc[...] = jnp.full(m_sc.shape, -jnp.inf, dtype=m_sc.dtype)
        l_sc[...] = jnp.zeros(l_sc.shape, dtype=l_sc.dtype)
        acc_sc[...] = jnp.zeros(acc_sc.shape, dtype=acc_sc.dtype)

    q = q_ref[0] * inv_scale
    s = lax.dot_general(q, k_ref[0], (((1,), (1,)), ((), ())),
                        preferred_element_type=jnp.float32)    # (tq, tk) f32

    m_prev = m_sc[...]
    m_new = jnp.maximum(m_prev, jnp.max(s, axis=-1, keepdims=True))
    alpha = jnp.exp(m_prev - m_new)
    p = jnp.exp(s - m_new)
    l_sc[...] = alpha * l_sc[...] + jnp.sum(p, axis=-1, keepdims=True)
    acc_sc[...] = alpha * acc_sc[...] + jnp.dot(
        p.astype(v_ref.dtype), v_ref[0], preferred_element_type=jnp.float32)
    m_sc[...] = m_new

    @pl.when(j == pl.num_programs(2) - 1)
    def _():
        o_ref[0] = (acc_sc[...] *
                    pl.reciprocal(l_sc[...], approx=True)).astype(o_ref.dtype)


def _sdpa_flash_kernel_masked(mask_ref, q_ref, k_ref, v_ref, o_ref,
                              m_sc, l_sc, acc_sc, *, inv_scale):
    j = pl.program_id(2)

    @pl.when(j == 0)
    def _():
        m_sc[...] = jnp.full(m_sc.shape, -jnp.inf, dtype=m_sc.dtype)
        l_sc[...] = jnp.zeros(l_sc.shape, dtype=l_sc.dtype)
        acc_sc[...] = jnp.zeros(acc_sc.shape, dtype=acc_sc.dtype)

    q = q_ref[0] * inv_scale
    s = lax.dot_general(q, k_ref[0], (((1,), (1,)), ((), ())),
                        preferred_element_type=jnp.float32)
    s = jnp.where(mask_ref[0] == 0, _MASK_VALUE, s)

    m_prev = m_sc[...]
    m_new = jnp.maximum(m_prev, jnp.max(s, axis=-1, keepdims=True))
    alpha = jnp.exp(m_prev - m_new)
    p = jnp.exp(s - m_new)
    l_sc[...] = alpha * l_sc[...] + jnp.sum(p, axis=-1, keepdims=True)
    acc_sc[...] = alpha * acc_sc[...] + jnp.dot(
        p.astype(v_ref.dtype), v_ref[0], preferred_element_type=jnp.float32)
    m_sc[...] = m_new

    @pl.when(j == pl.num_programs(2) - 1)
    def _():
        o_ref[0] = (acc_sc[...] *
                    pl.reciprocal(l_sc[...], approx=True)).astype(o_ref.dtype)


# --------------------------------------------------------------------------
# Wrapper
# --------------------------------------------------------------------------
def scaled_dot_product_attention(q, k, v, mask=None, *, d_tensor=None,
                                 return_attn=True, block_q=128, block_k=128):
    """Pallas port of ScaledDotProductAttention.forward (eval mode).

    q: [B, H, Lq, D], k/v: [B, H, Lk, D], mask (optional): [B, 1, Lq, Lk].
    Returns (output [B,H,Lq,D], attn [B,H,Lq,Lk]) when return_attn=True
    (torch parity; attn is emitted in q.dtype).  When return_attn=False the
    attention matrix is never materialised (flash path) and attn is None.

    block_q / block_k: 128 is safe on all generations; 256 matches the
    v6e/v7x 2x256x256 MXU when sequence lengths allow it.
    """
    B, H, Lq, D = q.shape
    Lk = k.shape[2]
    assert v.shape[2] == Lk
    inv_scale = 1.0 / math.sqrt(D if d_tensor is None else d_tensor)

    BH = B * H
    q3 = q.reshape(BH, Lq, D)
    k3 = k.reshape(BH, Lk, D)
    v3 = v.reshape(BH, Lk, D)
    mask3 = None
    if mask is not None:
        mask3 = mask.reshape(B, Lq, Lk)     # broadcast over heads via index_map

    # Tile sizes; fall back to the full extent when not divisible.
    # TODO(synk): ragged Lq/Lk (non-divisible by the block) would need in-kernel
    # iota masking of the padded keys; fallback to full-extent blocks for now.
    tq = block_q if (Lq % block_q == 0) else Lq
    tk = block_k if (Lk % block_k == 0) else Lk
    nq = Lq // tq
    nk = Lk // tk

    # Advisory cost for XLA's scheduler.
    itemsize = jnp.dtype(q.dtype).itemsize
    bytes_accessed = (BH * Lq * D + 2 * BH * Lk * D + BH * Lq * D) * itemsize
    if mask is not None:
        bytes_accessed += B * Lq * Lk * jnp.dtype(mask.dtype).itemsize
    if return_attn:
        bytes_accessed += BH * Lq * Lk * itemsize
    cost = pl.CostEstimate(flops=4 * BH * Lq * Lk * D,
                           transcendentals=BH * Lq * Lk,
                           bytes_accessed=bytes_accessed)

    if return_attn:
        compiler_params = pltpu.CompilerParams(
            dimension_semantics=("parallel", "parallel"),
            vmem_limit_bytes=64 * 1024 * 1024)
        out_shape = (jax.ShapeDtypeStruct((BH, Lq, D), q.dtype),
                     jax.ShapeDtypeStruct((BH, Lq, Lk), q.dtype))
        q_spec = pl.BlockSpec((1, tq, D), lambda bh, i: (bh, i, 0))
        kv_spec = pl.BlockSpec((1, Lk, D), lambda bh, i: (bh, 0, 0))
        o_spec = pl.BlockSpec((1, tq, D), lambda bh, i: (bh, i, 0))
        attn_spec = pl.BlockSpec((1, tq, Lk), lambda bh, i: (bh, i, 0))
        grid = (BH, nq)

        if mask3 is None:
            out3, attn3 = pl.pallas_call(
                functools.partial(_sdpa_attn_kernel, inv_scale=inv_scale),
                out_shape=out_shape, grid=grid,
                in_specs=[q_spec, kv_spec, kv_spec],
                out_specs=(o_spec, attn_spec),
                compiler_params=compiler_params,
                cost_estimate=cost,
            )(q3, k3, v3)
        else:
            mask_spec = pl.BlockSpec((1, tq, Lk), lambda bh, i: (bh // H, i, 0))
            out3, attn3 = pl.pallas_call(
                functools.partial(_sdpa_attn_kernel_masked, inv_scale=inv_scale),
                out_shape=out_shape, grid=grid,
                in_specs=[mask_spec, q_spec, kv_spec, kv_spec],
                out_specs=(o_spec, attn_spec),
                compiler_params=compiler_params,
                cost_estimate=cost,
            )(mask3, q3, k3, v3)
        return out3.reshape(B, H, Lq, D), attn3.reshape(B, H, Lq, Lk)

    # ---- flash path (no attention-matrix writeback) ----
    compiler_params = pltpu.CompilerParams(
        dimension_semantics=("parallel", "parallel", "arbitrary"),
        vmem_limit_bytes=64 * 1024 * 1024)
    out_shape = jax.ShapeDtypeStruct((BH, Lq, D), q.dtype)
    q_spec = pl.BlockSpec((1, tq, D), lambda bh, i, j: (bh, i, 0))
    k_spec = pl.BlockSpec((1, tk, D), lambda bh, i, j: (bh, j, 0))
    v_spec = pl.BlockSpec((1, tk, D), lambda bh, i, j: (bh, j, 0))
    o_spec = pl.BlockSpec((1, tq, D), lambda bh, i, j: (bh, i, 0))
    grid = (BH, nq, nk)
    scratch = [pltpu.VMEM((tq, 1), jnp.float32),   # running max
               pltpu.VMEM((tq, 1), jnp.float32),   # running denominator
               pltpu.VMEM((tq, D), jnp.float32)]   # output accumulator

    if mask3 is None:
        out3 = pl.pallas_call(
            functools.partial(_sdpa_flash_kernel, inv_scale=inv_scale),
            out_shape=out_shape, grid=grid,
            in_specs=[q_spec, k_spec, v_spec],
            out_specs=o_spec,
            scratch_shapes=scratch,
            compiler_params=compiler_params,
            cost_estimate=cost,
        )(q3, k3, v3)
    else:
        mask_spec = pl.BlockSpec((1, tq, tk), lambda bh, i, j: (bh // H, i, j))
        out3 = pl.pallas_call(
            functools.partial(_sdpa_flash_kernel_masked, inv_scale=inv_scale),
            out_shape=out_shape, grid=grid,
            in_specs=[mask_spec, q_spec, k_spec, v_spec],
            out_specs=o_spec,
            scratch_shapes=scratch,
            compiler_params=compiler_params,
            cost_estimate=cost,
        )(mask3, q3, k3, v3)
    return out3.reshape(B, H, Lq, D), None


def _reference(q, k, v, mask=None):
    d = q.shape[-1]
    s = jnp.einsum("bhqd,bhkd->bhqk", q.astype(jnp.float32),
                   k.astype(jnp.float32)) / math.sqrt(d)
    if mask is not None:
        s = jnp.where(mask == 0, -jnp.inf, s)
    p = jax.nn.softmax(s, axis=-1)
    o = jnp.einsum("bhqk,bhkd->bhqd", p, v.astype(jnp.float32))
    return o.astype(q.dtype), p


if __name__ == "__main__":
    key = jax.random.PRNGKey(0)
    kq, kk, kv = jax.random.split(key, 3)

    B, H, L, D = 2, 2, 8, 32
    q = jax.random.normal(kq, (B, H, L, D), dtype=jnp.float32)
    k = jax.random.normal(kk, (B, H, L, D), dtype=jnp.float32)
    v = jax.random.normal(kv, (B, H, L, D), dtype=jnp.float32)

    ref_out, ref_attn = _reference(q, k, v)

    # Torch-parity path: (output, attn)
    out, attn = scaled_dot_product_attention(q, k, v)
    jax.block_until_ready((out, attn))
    assert jnp.allclose(out, ref_out, atol=2e-3, rtol=2e-3)
    assert jnp.allclose(attn, ref_attn, atol=2e-3, rtol=2e-3)

    # Output-only flash path (no L^2 attn writeback)
    out_f, _ = scaled_dot_product_attention(q, k, v, return_attn=False)
    jax.block_until_ready(out_f)
    assert jnp.allclose(out_f, ref_out, atol=2e-3, rtol=2e-3)

    # Masked (causal-style) variants; mask broadcast over heads like torch.
    mask = jnp.broadcast_to(
        jnp.tril(jnp.ones((L, L), dtype=jnp.int32))[None, None], (B, 1, L, L))
    ref_out_m, ref_attn_m = _reference(q, k, v, mask=mask)

    out_m, attn_m = scaled_dot_product_attention(q, k, v, mask=mask)
    jax.block_until_ready((out_m, attn_m))
    assert jnp.allclose(out_m, ref_out_m, atol=2e-3, rtol=2e-3)
    assert jnp.allclose(attn_m, ref_attn_m, atol=2e-3, rtol=2e-3)

    out_mf, _ = scaled_dot_product_attention(q, k, v, mask=mask,
                                             return_attn=False)
    jax.block_until_ready(out_mf)
    assert jnp.allclose(out_mf, ref_out_m, atol=2e-3, rtol=2e-3)

    print("KERNEL_OK")
</pallas_src>

<mosaic_0001>
module attributes {stable_mosaic.version = 11 : i64} {
  func.func @_sdpa_attn_kernel(%arg0: i32, %arg1: i32, %arg2: memref<1x8x32xf32, #tpu.memory_space<vmem>>, %arg3: memref<1x8x32xf32, #tpu.memory_space<vmem>>, %arg4: memref<1x8x32xf32, #tpu.memory_space<vmem>>, %arg5: memref<1x8x32xf32, #tpu.memory_space<vmem>>, %arg6: memref<1x8x8xf32, #tpu.memory_space<vmem>>) attributes {dimension_semantics = [#tpu.dimension_semantics<parallel>, #tpu.dimension_semantics<parallel>], iteration_bounds = array<i64: 4, 1>, scalar_prefetch = 0 : i64, scratch_operands = 0 : i64, tpu.core_type = #tpu.core_type<tc>, window_params = [{transform_indices = @transform_0, window_bounds = array<i64: 1, 8, 32>}, {transform_indices = @transform_1, window_bounds = array<i64: 1, 8, 32>}, {transform_indices = @transform_2, window_bounds = array<i64: 1, 8, 32>}, {transform_indices = @transform_3, window_bounds = array<i64: 1, 8, 32>}, {transform_indices = @transform_4, window_bounds = array<i64: 1, 8, 8>}]} {
    %c0 = arith.constant 0 : index
    %c0_0 = arith.constant 0 : index
    %c0_1 = arith.constant 0 : index
    %0 = vector.load %arg2[%c0, %c0_0, %c0_1] : memref<1x8x32xf32, #tpu.memory_space<vmem>>, vector<1x8x32xf32>
    %1 = vector.shape_cast %0 : vector<1x8x32xf32> to vector<8x32xf32>
    %cst = arith.constant 0.176776692 : f32
    %2 = vector.broadcast %cst : f32 to vector<8x32xf32>
    %3 = arith.mulf %1, %2 : vector<8x32xf32>
    %c0_2 = arith.constant 0 : index
    %c0_3 = arith.constant 0 : index
    %c0_4 = arith.constant 0 : index
    %4 = vector.load %arg3[%c0_2, %c0_3, %c0_4] : memref<1x8x32xf32, #tpu.memory_space<vmem>>, vector<1x8x32xf32>
    %5 = vector.shape_cast %4 : vector<1x8x32xf32> to vector<8x32xf32>
    %cst_5 = arith.constant dense<0.000000e+00> : vector<8x8xf32>
    %6 = tpu.matmul %3, %5, %cst_5 {dimension_numbers = #tpu.dot_dimension_numbers<[1], [1], [0], [0], [0, 0, 1, 0], [], []>} : vector<8x32xf32>, vector<8x32xf32>, vector<8x8xf32> -> vector<8x8xf32>
    %cst_6 = arith.constant dense<0xFF800000> : vector<8xf32>
    %7 = vector.multi_reduction <maximumf>, %6, %cst_6 [1] : vector<8x8xf32> to vector<8xf32>
    %8 = vector.shape_cast %7 : vector<8xf32> to vector<8x1xf32>
    %9 = vector.broadcast %8 : vector<8x1xf32> to vector<8x8xf32>
    %10 = arith.subf %6, %9 : vector<8x8xf32>
    %11 = math.exp %10 : vector<8x8xf32>
    %cst_7 = arith.constant dense<0.000000e+00> : vector<8xf32>
    %12 = vector.multi_reduction <add>, %11, %cst_7 [1] : vector<8x8xf32> to vector<8xf32>
    %13 = vector.shape_cast %12 : vector<8xf32> to vector<8x1xf32>
    %14 = tpu.reciprocal %13 {approx = true} : vector<8x1xf32> -> vector<8x1xf32>
    %15 = vector.broadcast %14 : vector<8x1xf32> to vector<8x8xf32>
    %16 = arith.mulf %11, %15 : vector<8x8xf32>
    %c0_8 = arith.constant 0 : index
    %c0_9 = arith.constant 0 : index
    %c0_10 = arith.constant 0 : index
    %17 = vector.load %arg6[%c0_8, %c0_9, %c0_10] : memref<1x8x8xf32, #tpu.memory_space<vmem>>, vector<1x8x8xf32>
    %18 = vector.shape_cast %17 : vector<1x8x8xf32> to vector<8x8xf32>
    %19 = vector.shape_cast %16 : vector<8x8xf32> to vector<1x8x8xf32>
    tpu.vector_store %arg6[%c0_8, %c0_9, %c0_10], %19 {strides = array<i32>} : memref<1x8x8xf32, #tpu.memory_space<vmem>>, vector<1x8x8xf32>,
    %c0_11 = arith.constant 0 : index
    %c0_12 = arith.constant 0 : index
    %c0_13 = arith.constant 0 : index
    %20 = vector.load %arg4[%c0_11, %c0_12, %c0_13] : memref<1x8x32xf32, #tpu.memory_space<vmem>>, vector<1x8x32xf32>
    %21 = vector.shape_cast %20 : vector<1x8x32xf32> to vector<8x32xf32>
    %cst_14 = arith.constant dense<0.000000e+00> : vector<8x32xf32>
    %22 = tpu.matmul %16, %21, %cst_14 {dimension_numbers = #tpu.dot_dimension_numbers<[1], [0], [0], [1], [0, 0, 1, 1], [], []>} : vector<8x8xf32>, vector<8x32xf32>, vector<8x32xf32> -> vector<8x32xf32>
    %c0_15 = arith.constant 0 : index
    %c0_16 = arith.constant 0 : index
    %c0_17 = arith.constant 0 : index
    %23 = vector.load %arg5[%c0_15, %c0_16, %c0_17] : memref<1x8x32xf32, #tpu.memory_space<vmem>>, vector<1x8x32xf32>
    %24 = vector.shape_cast %23 : vector<1x8x32xf32> to vector<8x32xf32>
    %25 = vector.shape_cast %22 : vector<8x32xf32> to vector<1x8x32xf32>
    tpu.vector_store %arg5[%c0_15, %c0_16, %c0_17], %25 {strides = array<i32>} : memref<1x8x32xf32, #tpu.memory_space<vmem>>, vector<1x8x32xf32>,
    return
  }
  func.func @transform_0(%arg0: i32, %arg1: i32) -> (i32, i32, i32) {
    %c0_i32 = arith.constant 0 : i32
    %c0_i32_0 = arith.constant 0 : i32
    return %arg0, %arg1, %c0_i32 : i32, i32, i32
  }
  func.func @transform_1(%arg0: i32, %arg1: i32) -> (i32, i32, i32) {
    %c0_i32 = arith.constant 0 : i32
    %c0_i32_0 = arith.constant 0 : i32
    %c0_i32_1 = arith.constant 0 : i32
    return %arg0, %c0_i32, %c0_i32_0 : i32, i32, i32
  }
  func.func @transform_2(%arg0: i32, %arg1: i32) -> (i32, i32, i32) {
    %c0_i32 = arith.constant 0 : i32
    %c0_i32_0 = arith.constant 0 : i32
    %c0_i32_1 = arith.constant 0 : i32
    return %arg0, %c0_i32, %c0_i32_0 : i32, i32, i32
  }
  func.func @transform_3(%arg0: i32, %arg1: i32) -> (i32, i32, i32) {
    %c0_i32 = arith.constant 0 : i32
    %c0_i32_0 = arith.constant 0 : i32
    return %arg0, %arg1, %c0_i32 : i32, i32, i32
  }
  func.func @transform_4(%arg0: i32, %arg1: i32) -> (i32, i32, i32) {
    %c0_i32 = arith.constant 0 : i32
    %c0_i32_0 = arith.constant 0 : i32
    return %arg0, %arg1, %c0_i32 : i32, i32, i32
  }
}

</mosaic_0001>

<bundles_post_ra>
// kernel: tpu_custom_call.1
= control target key start
LH: loop header
LB: loop body
LE: loop exit
PB: predicated region body
PF: predicated region fallthrough
CT: control target
= control target key end

     0   :  { %s1262_s0 = inlined_call_operand.hbm [shape: f32[4,8,32], index: 0, kind: input, shape index: {}]   ;;  %s1263_s1 = inlined_call_operand.hbm [shape: f32[4,8,32], index: 1, kind: input, shape index: {}]   ;;  %s1264_s2 = inlined_call_operand.hbm [shape: f32[4,8,32], index: 2, kind: input, shape index: {}]   ;;  %s1265_s3 = inlined_call_operand.hbm [shape: f32[4,8,32], index: 3, kind: output, shape index: {0}]   ;;  %s1266_s4 = inlined_call_operand.hbm [shape: f32[4,8,8], index: 4, kind: output, shape index: {1}]  }
   0x1   :  { %1270 = sst [smem:[#allocation18_spill]] %s1263_s1 }
   0x2   :  { %10 = vsyncpa [#allocation3], 0 }
   0x3   :  { %12 = vsyncpa [#allocation3 + $0x1], 0 }
   0x4   :  { %13 = vsyncpa [#allocation6], 0 }
   0x5   :  { %15 = vsyncpa [#allocation6 + $0x1], 0 }
   0x6   :  { %16 = vsyncpa [#allocation4], 0 }
   0x7   :  { %18 = vsyncpa [#allocation4 + $0x1], 0 }
   0x8   :  { %19 = vsyncpa [#allocation10], 0 }
   0x9   :  { %21 = vsyncpa [#allocation10 + $0x1], 0  ;;  %s1026_s15 = smov 0   ;;  %s1028_s16 = smov 0  }
   0xa   :  { %s1030_s17 = smov 0   ;;  %s1032_s18 = smov 0  }
   0xb   :  { %s1034_s19 = smov 0   ;;  %s1036_s20 = smov 0  }
   0xc LB: > { %1271 = sst [smem:[#allocation15_spill]] %s988_s19  ;;  %s1057_s21 = sadd.s32 4294967295, %s992_s20   ;;  %s992_s20 = sphi %s1036_s20, %s27_s20   ;;  %s988_s19 = sphi %s1034_s19, %s1284_s19   ;;  %s984_s18 = sphi %s1032_s18, %s1283_s18   ;;  %s980_s17 = sphi %s1030_s17, %s1287_s17   ;;  %s976_s16 = sphi %s1028_s16, %s1286_s16   ;;  %s972_s15 = sphi %s1026_s15, %s1285_s15  }
   0xd   : > { %s673_s22 = sadd.s32 4294967294, %s992_s20   ;;  %s39_s23 = sadd.s32 1, %s988_s19 }
   0xe   : > { %s48_s24 = sadd.s32 1, %s980_s17  ;;  %p41_p0 = scmp.ge.s32.totalorder %s39_s23, 4 }
   0xf   : > { %p55_p1 = scmp.ne.s32.totalorder %s980_s17, %s976_s16  ;;  %p56_p2 = scmp.eq.s32.totalorder %s992_s20, 0 }
  0x10   : > { %p61_p3 = scmp.ne.s32.totalorder %s976_s16, %s972_s15  ;;  %s1289_s23 = smov (%p41_p0, %s39_s23), 0 }
  0x11   : > { %1272 = sst [smem:[#allocation16_spill]] %s1289_s23  ;;  %p1069_p4 = por %p56_p2, %p55_p1 }
  0x12   : > { %p62_p5 = scmp.eq.s32.totalorder %s1057_s21, 0  ;;  %s43_s26 = ssub.s32 %s988_s19, %s1289_s23 }
  0x13   : > { %p139_p6 = scmp.eq.s32.totalorder %s1057_s21, 3  ;;  %p46_p7 = scmp.eq.s32.totalorder %s43_s26, 0 }
  0x14   : > { %p1077_p8 = por %p62_p5, %p61_p3  ;;  %p145_p10 = scmp.eq.s32.totalorder %s673_s22, 3 }
  0x15   : > { %p1081_p9 = por %p139_p6, %p55_p1  ;;  %p738_p12 = scmp.lt.s32.totalorder %s992_s20, 4 }
  0x16   : > { %s1086_s29 = scalar_select %p46_p7, %s980_s17, %s48_s24  }
  0x17   : > { %p1088_p11 = por %p145_p10, %p61_p3  ;;  %s1267_s5 = sand.u32 1, %s980_s17  }
  0x18   : > { %1276 = sst [smem:[#allocation17_spill]] %s1086_s29  ;;  %s1096_s6 = sshll.u32 %s1267_s5, 3 }
  0x19   : > { %s1099_s7 = sshll.u32 %s988_s19, 7  ;;  %p1103_p13 = pnand %p738_p12, %p1069_p4 }
  0x1a   : > { %s212_s9 = sand.u32 1, %s992_s20   ;;  %s1279_s1 = sld [smem:[#allocation18_spill]] }
  0x1b   : > { %s216_s13 = scalar_lea.vmem [#allocation5], %s1096_s6  ;;  %p682_p0 = scmp.ge.s32.totalorder %s992_s20, 1 }
  0x1c   : > { %s223_s14 = sshll.u32 %s216_s13, 4  ;;  %p246_p1 = scmp.lt.s32.totalorder %s992_s20, 5  ;;  %s224_s14 = int_to_ptr.vmem [resolvable:$true] %s223_s14 }
  0x1d   : > { %s1115_s22 = scalar_lea.sflag [#allocation6], %s212_s9  ;;  %p796_p2 = pneg %p1103_p13 }
  0x1e   : > { %s807_s24 = scalar_lea.vmem %s224_s14, 128  ;;  %s994_s25 = smov [#allocation5]  }
  0x1f   : > { %p808_p3 = scmp.ne.s32.totalorder %s224_s14, %s807_s24  ;;  %s812_s26 = sshll.u32 %s994_s25, 4  ;;  %s813_s26 = int_to_ptr.vmem [resolvable:$false] %s812_s26 }
  0x20   : > { %s221_s12 = scalar_lea.hbm %s1279_s1, %s1099_s7  ;;  %s814_s10 = scalar_lea.vmem %s813_s26, 256 }
  0x21   : > { %p810_p4 = pnand %p808_p3, %p796_p2  ;;  %p815_p6 = scmp.lt.s32.totalorder %s224_s14, %s813_s26 }
  0x22   : > { %p816_p7 = scmp.lt.s32.totalorder %s814_s10, %s807_s24 }
  0x23   : > { %p811_p5 = pneg %p810_p4 }
  0x24   : > { %p817_p10 = por %p816_p7, %p815_p6 }
  0x26   : > { %p818_p12 = pnand %p817_p10, %p811_p5 }
  0x28   : > { %821 = shalt.err (!%p818_p12)
}
  0x29   : > { %727 = dma.hbm_to_vmem [thread:$0]  (!%p1103_p13), %s221_s12, 128, %s224_s14, %s1115_s22  }
  0x2a   : > { %p1129_p3 = pnand %p682_p0, %p246_p1  ;;  %s203_s24 = scalar_lea.hbm %s1262_s0, %s1099_s7 }
  0x2b   : > { %s197_s25 = scalar_lea.vmem [#allocation2], %s1096_s6  ;;  %s239_s1 = scalar_lea.hbm %s1264_s2, %s1099_s7 }
  0x2c   : > { %s205_s26 = sshll.u32 %s197_s25, 4  ;;  %s1281_s23 = sand.u32 1, %s980_s17   ;;  %s206_s26 = int_to_ptr.vmem [resolvable:$true] %s205_s26 }
  0x2d   : > { %s194_s19 = scalar_lea.sflag [#allocation3], %s1281_s23  ;;  %s835_s12 = scalar_lea.vmem %s206_s26, 128 }
  0x2e   : > { %p836_p4 = scmp.ne.s32.totalorder %s206_s26, %s835_s12  ;;  %s995_s14 = smov [#allocation2]  }
  0x2f   : > { %s840_s29 = sshll.u32 %s995_s14, 4  ;;  %s841_s29 = int_to_ptr.vmem [resolvable:$false] %s840_s29 }
  0x30   : > { %p838_p0 = pnand %p836_p4, %p796_p2  ;;  %s842_s11 = scalar_lea.vmem %s841_s29, 256 }
  0x31   : > { %p843_p5 = scmp.lt.s32.totalorder %s206_s26, %s841_s29  ;;  %p844_p6 = scmp.lt.s32.totalorder %s842_s11, %s835_s12 }
  0x32   : > { %p839_p1 = pneg %p838_p0 }
  0x33   : > { %p845_p7 = por %p844_p6, %p843_p5 }
  0x35   : > { %p846_p10 = pnand %p845_p7, %p839_p1 }
  0x37   : > { %849 = shalt.err (!%p846_p10)
}
  0x38   : > { %724 = dma.hbm_to_vmem [thread:$0]  (!%p1103_p13), %s203_s24, 128, %s206_s26, %s194_s19  }
  0x39   : > { %s234_s23 = scalar_lea.vmem [#allocation7], %s1096_s6  ;;  %s996_s25 = smov [#allocation7]  }
  0x3a   : > { %s241_s5 = sshll.u32 %s234_s23, 4  ;;  %s868_s29 = sshll.u32 %s996_s25, 4  ;;  %s242_s5 = int_to_ptr.vmem [resolvable:$true] %s241_s5  ;;  %s869_s29 = int_to_ptr.vmem [resolvable:$false] %s868_s29 }
  0x3b   : > { %s863_s13 = scalar_lea.vmem %s242_s5, 128  ;;  %s870_s10 = scalar_lea.vmem %s869_s29, 256 }
  0x3c   : > { %p864_p12 = scmp.ne.s32.totalorder %s242_s5, %s863_s13  ;;  %p871_p1 = scmp.lt.s32.totalorder %s242_s5, %s869_s29 }
  0x3d   : > { %p872_p5 = scmp.lt.s32.totalorder %s870_s10, %s863_s13 }
  0x3e   : > { %p866_p4 = pnand %p864_p12, %p796_p2 }
  0x3f   : > { %p873_p6 = por %p872_p5, %p871_p1 }
  0x40   : > { %p867_p0 = pneg %p866_p4 }
  0x42   : > { %p874_p7 = pnand %p873_p6, %p867_p0 }
  0x44   : > { %877 = shalt.err (!%p874_p7)
}
  0x45   : > { %730 = dma.hbm_to_vmem [thread:$0]  (!%p1103_p13), %s239_s1, 128, %s242_s5, %s1115_s22  }
  0x46   : > { %250 = sbr.rel (%p1129_p3) target bundleno = 797 (0x31d), region = 32  ;;  %s1164_s24 = sand.u32 (!%p1129_p3), 1, %s976_s16  }
  0x47   : > { %s1167_s26 = sshll.u32 (!%p1129_p3), %s1164_s24, 3  ;;  %s253_s8 = scalar_lea.sflag (!%p1129_p3), [#allocation3], %s1164_s24 }
  0x48   : > { %s256_s12 = scalar_lea.vmem (!%p1129_p3), [#allocation2], %s1167_s26 }
  0x4b   : > { %955 = dma.done.wait (%p1077_p8), %s253_s8, 128  }
  0x4c   : > { %957 = vsyncadd (%p1077_p8), %s253_s8, 4294967168  ;;  %s261_s1 = sand.u32 1, %s1057_s21   ;;  %s265_s22 = scalar_lea.vmem [#allocation5], %s1167_s26 }
  0x4d   : > { %s262_s7 = scalar_lea.sflag [#allocation6], %s261_s1 }
  0x4e   : > { %959 = dma.done.wait (%p1077_p8), %s262_s7, 256  }
  0x4f   : > { %961 = vsyncadd (%p1077_p8), %s262_s7, 4294967040  ;;  %v997_v0 = vmov 0.0   ;;  %vm998_vm0 = vmmov 0   ;;  %vm317_vm1 = vcmask 261120   ;;  %v316_v1 = vld [vmem:[%s265_s22] sm:$0xff]  ;;  %v314_v2 = vld [vmem:[%s256_s12] sm:$0xff] }
  0x50   : > { %701 = vmatprep.subr.mxu0 %v997_v0  ;;  %703 = vmatprep.mubr.msk.f32.mxu0 %vm998_vm0, %v997_v0  ;;  %v315_v3 = vmul.f32 0.17677669, %v314_v2  ;;  %vm394_vm2 = vcmask 64512   ;;  %s274_s21 = scalar_lea.vmem [#allocation7], %s1167_s26  ;;  %s313_s27 = scalar_lea.vmem [#allocation9], %s1167_s26 }
  0x51   : > { %706 = vmatprep.subr.mxu1 %v997_v0  ;;  %708 = vmatprep.mubr.msk.f32.mxu1 %vm998_vm0, %v997_v0  ;;  %v407_v12 = vld [vmem:[%s274_s21] sm:$0xff]  ;;  %s693_s9 = sshll.u32 %s984_s18, 7  ;;  %s516_s5 = sshll.u32 %s313_s27, 4  ;;  %s517_s5 = int_to_ptr.vmem [resolvable:$true] %s516_s5 }
  0x52   : > { %702 = vmatpush3.xpose.msk.msra.mxu0 %vm317_vm1, %v316_v1  ;;  %707 = vmatpush3.msra.mxu1 %v407_v12  ;;  %s514_s23 = scalar_lea.hbm %s1266_s4, %s693_s9  ;;  %s488_s13 = scalar_lea.sflag [#allocation10], %s1164_s24 }
  0x53   : > { %s878_s25 = scalar_lea.vmem %s517_s5, 128  ;;  %s999_s29 = smov [#allocation9]  }
  0x54   : > { %p879_p8 = scmp.ne.s32.totalorder %s517_s5, %s878_s25  ;;  %s882_s10 = sshll.u32 %s999_s29, 4  ;;  %s883_s10 = int_to_ptr.vmem [resolvable:$false] %s882_s10 }
  0x55   : > { %704 = vmatmul.mubr.msk.f32.vlgmr.msra.gmra.mxu0 %vm317_vm1, %v315_v3  ;;  %s884_s19 = scalar_lea.vmem %s883_s10, 256  ;;  %p885_p3 = scmp.lt.s32.totalorder %s517_s5, %s883_s10 }
  0x56   : > { %p880_p13 = pnand %p879_p8, %p1081_p9  ;;  %p886_p10 = scmp.lt.s32.totalorder %s884_s19, %s878_s25 }
  0x58   : > { %p881_p2 = pneg %p880_p13  ;;  %p887_p12 = por %p886_p10, %p885_p3 }
  0x5a   : > { %p888_p4 = pnand %p887_p12, %p881_p2 }
 0x115   : > { %v390_v4 = vpop.f32.mrf.mxu0 }
 0x116   : > { %v395_v5 = vsel %vm394_vm2, %v390_v4, -inf }
 0x117   : > { %396 = vmax.xlane.f32.xlu0 %v395_v5  ;;  %v705_v6 = vpop.f32.mrf.mxu0 }
 0x1a0   : > { %v397_v7 = vpop.xlane.xlu0 %396 }
 0x1a1   : > { %v398_v8 = vsub.f32 %v390_v4, %v397_v7 }
 0x1a3   : > { %v399_v9 = vmul.f32 1.442695, %v398_v8 }
 0x1a5   : > { %790 = vpow2.f32 %v399_v9 }
 0x1b2   : > { %v791_v10 = vpop.eup %790 }
 0x1b3   : > { %v401_v11 = vsel %vm394_vm2, %v791_v10, 0.0 }
 0x1b4   : > { %402 = vadd.xlane.f32.xlu0 %v401_v11 }
 0x23d   : > { %v403_v13 = vpop.xlane.xlu0 %402 }
 0x23e   : > { %792 = vrcp.f32 %v403_v13 }
 0x24b   : > { %v793_v14 = vpop.eup %792 }
 0x24c   : > { %v405_v15 = vmul.f32 %v793_v14, %v791_v10 }
 0x24e   : > { %709 = vmatmul.mubr.msk.f32.vlgmr.msra.gmra.mxu1 %vm394_vm2, %v405_v15  ;;  %406 = vst.msk [vmem:[%s313_s27] sm:$0xff] %vm394_vm2, %v405_v15 }
 0x24f   : > { %891 = shalt.err (!%p888_p4)
}
 0x250   : > { %s892_s6 = scalar_lea.hbm %s514_s23, 128  ;;  %s896_s1 = scalar_lea.hbm %s1266_s4, 512 }
 0x251   : > { %p893_p0 = scmp.ne.s32.totalorder %s514_s23, %s892_s6  ;;  %p897_p6 = scmp.lt.s32.totalorder %s514_s23, %s1266_s4 }
 0x252   : > { %p898_p7 = scmp.lt.s32.totalorder %s896_s1, %s892_s6 }
 0x253   : > { %p894_p1 = pnand %p893_p0, %p1081_p9 }
 0x254   : > { %p899_p8 = por %p898_p7, %p897_p6 }
 0x255   : > { %p895_p5 = pneg %p894_p1 }
 0x257   : > { %p900_p13 = pnand %p899_p8, %p895_p5 }
 0x259   : > { %903 = shalt.err (!%p900_p13)
}
 0x25a   : > { %718 = dma.vmem_to_hbm [thread:$0]  (%p1081_p9), %s517_s5, 128, %s514_s23, %s488_s13  }
 0x25b   : > { %s306_s21 = scalar_lea.vmem [#allocation8], %s1167_s26  ;;  %s1214_s25 = scalar_lea.hbm %s1265_s3, %s693_s9 }
 0x25c   : > { %s502_s27 = sshll.u32 %s306_s21, 4  ;;  %s483_s29 = scalar_lea.sflag [#allocation4], %s1164_s24  ;;  %s1216_s27 = int_to_ptr.vmem [resolvable:$true] %s502_s27 }
 0x25d   : > { %s904_s10 = scalar_lea.vmem %s1216_s27, 128  ;;  %s1000_s18 = smov [#allocation8]  }
 0x25e   : > { %p905_p2 = scmp.ne.s32.totalorder %s1216_s27, %s904_s10  ;;  %s908_s26 = sshll.u32 %s1000_s18, 4  ;;  %s909_s26 = int_to_ptr.vmem [resolvable:$false] %s908_s26 }
 0x25f   : > { %s910_s9 = scalar_lea.vmem %s909_s26, 256  ;;  %p911_p12 = scmp.lt.s32.totalorder %s1216_s27, %s909_s26 }
 0x260   : > { %p906_p3 = pnand %p905_p2, %p1081_p9  ;;  %p912_p4 = scmp.lt.s32.totalorder %s910_s9, %s904_s10 }
 0x262   : > { %p907_p10 = pneg %p906_p3  ;;  %p913_p0 = por %p912_p4, %p911_p12 }
 0x264   : > { %p914_p1 = pnand %p913_p0, %p907_p10 }
 0x30e   : > { %v477_v16 = vpop.f32.mrf.mxu1 }
 0x30f   : > { %481 = vst.msk [vmem:[%s306_s21] sm:$0xff] %vm317_vm1, %v477_v16 }
 0x310   : > { %v710_v17 = vpop.f32.mrf.mxu1 }
 0x311   : > { %917 = shalt.err (!%p914_p1)
}
 0x312   : > { %s918_s23 = scalar_lea.hbm %s1214_s25, 128  ;;  %s922_s13 = scalar_lea.hbm %s1265_s3, 512 }
 0x313   : > { %p919_p5 = scmp.ne.s32.totalorder %s1214_s25, %s918_s23  ;;  %p923_p8 = scmp.lt.s32.totalorder %s1214_s25, %s1265_s3 }
 0x314   : > { %p924_p13 = scmp.lt.s32.totalorder %s922_s13, %s918_s23 }
 0x315   : > { %p920_p6 = pnand %p919_p5, %p1081_p9 }
 0x316   : > { %p925_p2 = por %p924_p13, %p923_p8 }
 0x317   : > { %p921_p7 = pneg %p920_p6 }
 0x319   : > { %p926_p3 = pnand %p925_p2, %p921_p7 }
 0x31b   : > { %929 = shalt.err (!%p926_p3)
}
 0x31c   : > { %717 = dma.vmem_to_hbm [thread:$0]  (%p1081_p9), %s1216_s27, 128, %s1214_s25, %s483_s29  }
 0x31d PF: > { %p739_p10 = scmp.ge.s32.totalorder %s992_s20, 2  ;;  %s528_s8 = sand.u32 1, %s972_s15  }
 0x31e   : > { %s529_s12 = scalar_lea.sflag [#allocation4], %s528_s8 }
 0x31f   : > { %p732_p12 = pnand %p739_p10, %p1088_p11 }
 0x321   : > { %p733_p4 = pneg %p732_p12 }
 0x323   : > { %963 = dma.done.wait (%p733_p4), %s529_s12, 128  }
 0x324   : > { %965 = vsyncadd (%p733_p4), %s529_s12, 4294967168  ;;  %s538_s1 = scalar_lea.sflag [#allocation10], %s528_s8 }
 0x325   : > { %967 = dma.done.wait (%p733_p4), %s538_s1, 128  }
 0x326   : > { %969 = vsyncadd (%p733_p4), %s538_s1, 4294967168  ;;  %s27_s20 = sadd.s32 1, %s992_s20   ;;  %s1282_s28 = sld [smem:[#allocation17_spill]] }
 0x327   : > { %p24_p0 = scmp.ge.s32.totalorder %s27_s20, 6   ;;  %s1283_s18 = sld [smem:[#allocation15_spill]] }
 0x328   : > { %s1284_s19 = sld [smem:[#allocation16_spill]]  ;;  %s1285_s15 = smov %s976_s16 }
 0x329   : > { %s1286_s16 = smov %s980_s17  ;;  %26 = sbr.rel (!%p24_p0) target bundleno = 12 (0xc), region = 118 }
 0x32c   : > { %s1287_s17 = smov %s1282_s28 }
 0x32e   :  { %543 = vsyncpa [#allocation3], 1 }
 0x32f   :  { %545 = vsyncpa [#allocation3 + $0x1], 1 }
 0x330   :  { %546 = vsyncpa [#allocation6], 1 }
 0x331   :  { %548 = vsyncpa [#allocation6 + $0x1], 1 }
 0x332   :  { %549 = vsyncpa [#allocation4], 1 }
 0x333   :  { %551 = vsyncpa [#allocation4 + $0x1], 1 }
 0x334   :  { %552 = vsyncpa [#allocation10], 1 }
 0x335   :  { %554 = vsyncpa [#allocation10 + $0x1], 1 }

</bundles_post_ra>
